<compile_context>
chip_gen: v7x
topology: tpu7x:2x2x1
jax: 0.10.0
libtpu: 0.0.40
codegen_flags: <defaults>
</compile_context>

<pallas_src>
import functools

import jax
import jax.numpy as jnp
from jax.experimental import pallas as pl
from jax.experimental.pallas import tpu as pltpu


BN_EPS = 1e-5
OUT_LAYER_SIZE = 1


# ----------------------------- Fused Pallas kernel ---------------------------

def _make_fused_kernel(n_hidden):
    """Kernel refs: xT, (w, scale, shift) * n_hidden, w_out_col, b_out, o."""
    assert n_hidden >= 1

    def kernel(*refs):
        xT_ref = refs[0]
        o_ref = refs[-1]
        h = xT_ref[...]                                  # [f_in, tb]  bf16, batch on lanes
        a = None
        idx = 1
        for li in range(n_hidden):
            w_ref, scale_ref, shift_ref = refs[idx], refs[idx + 1], refs[idx + 2]
            idx += 3
            # MXU: [f_out, f_in] @ [f_in, tb] -> [f_out, tb], f32 accumulation.
            y = jnp.dot(w_ref[...], h, preferred_element_type=jnp.float32)
            # Folded BN (+ Linear bias) and ReLU on the VPU; scale/shift are [f_out, 1]
            # sublane broadcasts over the lane (batch) axis.  Epilogue kept in f32.
            a = jnp.maximum(y * scale_ref[...] + shift_ref[...], 0.0)
            if li + 1 < n_hidden:
                h = a.astype(jnp.bfloat16)               # cast only at the next dot's input
        w_out_ref, b_out_ref = refs[idx], refs[idx + 1]
        # OUT_LAYER_SIZE == 1: VPU multiply + XLU sublane reduction -> lane-dense [1, tb].
        out = jnp.sum(a * w_out_ref[...], axis=0, keepdims=True) + b_out_ref[...]
        o_ref[...] = out.astype(o_ref.dtype)

    return kernel


# ------------------------------ JAX wrapper ----------------------------------

def _const_spec(shape):
    """Resident (constant block-index) spec; single-buffered when supported."""
    const_map = lambda i: (0, 0)
    try:
        return pl.BlockSpec(shape, const_map, pipeline_mode=pl.Buffered(1))
    except TypeError:  # older jax without pipeline_mode kwarg
        return pl.BlockSpec(shape, const_map)


@functools.partial(jax.jit, static_argnames=("tb",))
def diabetes_binary_nn_forward(x, hidden_params, out_params, *, tb):
    """Eval-mode forward. x: [B, input_size] -> [B, 1]. tb: batch (lane) tile size."""
    B, f_in = x.shape
    assert B % tb == 0, "batch must be divisible by the batch tile"
    n_hidden = len(hidden_params)

    # Batch-on-lanes: one wrapper-side transpose + bf16 cast of the dominant HBM stream.
    x_t = x.T.astype(jnp.bfloat16)                       # [f_in, B]

    batch_map = lambda i: (0, i)

    in_specs = [pl.BlockSpec((f_in, tb), batch_map)]
    flat_args = [x_t]
    for p in hidden_params:
        in_specs += [_const_spec(p["w"].shape),
                     _const_spec(p["scale"].shape),
                     _const_spec(p["shift"].shape)]
        flat_args += [p["w"], p["scale"], p["shift"]]
    in_specs += [_const_spec(out_params["w_col"].shape),
                 _const_spec(out_params["b"].shape)]
    flat_args += [out_params["w_col"], out_params["b"]]

    # Advisory cost estimate for XLA's scheduler around this custom call.
    flops = sum(2 * B * p["w"].shape[0] * p["w"].shape[1] for p in hidden_params)
    flops += 2 * B * out_params["w_col"].shape[0]
    param_bytes = sum(p["w"].size * p["w"].dtype.itemsize
                      + p["scale"].size * 4 + p["shift"].size * 4
                      for p in hidden_params)
    param_bytes += out_params["w_col"].size * 4 + out_params["b"].size * 4
    bytes_accessed = B * f_in * 2 + param_bytes + B * 4

    out_row = pl.pallas_call(
        _make_fused_kernel(n_hidden),
        out_shape=jax.ShapeDtypeStruct((1, B), jnp.float32),
        grid=(B // tb,),
        in_specs=in_specs,
        out_specs=pl.BlockSpec((1, tb), batch_map),      # lane-dense output row
        compiler_params=pltpu.CompilerParams(
            dimension_semantics=("parallel",)),
        cost_estimate=pl.CostEstimate(flops=flops, transcendentals=0,
                                      bytes_accessed=bytes_accessed),
    )(*flat_args)
    return out_row.reshape(B, OUT_LAYER_SIZE)


# ----------------------- Parameter construction (synthetic) ------------------

def init_params(key, input_size, hidden_layers_sizes):
    """Synthetic params matching DiabetesBinaryNN layer shapes.

    Returns (hidden_params, out_params, raw_params): kernel-ready folded parameters
    (batch-on-lanes layout, bf16 weights) and the unfolded PyTorch-style f32
    parameters used for the pure-JAX reference check.
    """
    hidden_params, raw_hidden = [], []
    sizes = [input_size] + list(hidden_layers_sizes)
    for i in range(len(hidden_layers_sizes)):
        fin, fout = sizes[i], sizes[i + 1]
        key, kw, kb, kg, kbe, km, kv = jax.random.split(key, 7)
        w = jax.random.normal(kw, (fout, fin), jnp.float32) * 0.1   # PyTorch layout [out,in]
        b = jax.random.normal(kb, (fout,), jnp.float32) * 0.1
        gamma = 1.0 + 0.1 * jax.random.normal(kg, (fout,), jnp.float32)
        beta = 0.1 * jax.random.normal(kbe, (fout,), jnp.float32)
        r_mean = 0.1 * jax.random.normal(km, (fout,), jnp.float32)
        r_var = jnp.abs(1.0 + 0.1 * jax.random.normal(kv, (fout,), jnp.float32))
        # Fold eval-mode BatchNorm1d AND the Linear bias into per-feature scale/shift:
        #   BN(xW^T + b) = (xW^T) * scale + ((b - mean) * scale + beta)
        scale = gamma / jnp.sqrt(r_var + BN_EPS)
        shift = (b - r_mean) * scale + beta
        hidden_params.append(dict(
            w=w.astype(jnp.bfloat16),          # [out, in]: kernel does W @ h (batch on lanes)
            scale=scale.reshape(fout, 1),      # sublane-broadcast per-feature scale (f32)
            shift=shift.reshape(fout, 1),
        ))
        raw_hidden.append(dict(w=w, b=b, gamma=gamma, beta=beta,
                               mean=r_mean, var=r_var))

    fin = hidden_layers_sizes[-1]
    key, kw, kb = jax.random.split(key, 3)
    w_out = jax.random.normal(kw, (OUT_LAYER_SIZE, fin), jnp.float32) * 0.1
    b_out = jax.random.normal(kb, (OUT_LAYER_SIZE,), jnp.float32) * 0.1
    out_params = dict(
        w_col=w_out.reshape(fin, 1),           # f32 column for VPU multiply + sublane reduce
        b=b_out.reshape(1, OUT_LAYER_SIZE),
    )
    raw_out = dict(w=w_out, b=b_out)
    return hidden_params, out_params, (raw_hidden, raw_out)


def reference_forward(x, raw_params):
    """Pure-JAX f32 eval-mode reference with unfolded BN (validates the folding too)."""
    raw_hidden, raw_out = raw_params
    h = x
    for p in raw_hidden:
        y = h @ p["w"].T + p["b"]
        y = (y - p["mean"]) / jnp.sqrt(p["var"] + BN_EPS) * p["gamma"] + p["beta"]
        h = jnp.maximum(y, 0.0)
    return h @ raw_out["w"].T + raw_out["b"]


# ---------------------------------- main --------------------------------------

if __name__ == "__main__":
    key = jax.random.PRNGKey(0)

    batch = 256                     # small demo batch
    tb = 128                        # lane-dense batch tile; grid=(2,) -> shards over v7x's 2 TCs
    input_size = 16
    hidden_layers_sizes = [32, 32]

    key, kx, kp = jax.random.split(key, 3)
    x = jax.random.normal(kx, (batch, input_size), jnp.float32)

    hidden_params, out_params, raw_params = init_params(kp, input_size,
                                                        hidden_layers_sizes)

    out = diabetes_binary_nn_forward(x, hidden_params, out_params, tb=tb)
    jax.block_until_ready(out)

    ref = reference_forward(x, raw_params)

    assert out.shape == (batch, OUT_LAYER_SIZE), out.shape
    # Loose tolerance: kernel streams x / hidden weights in bf16 (f32 accumulation),
    # reference is full f32 with unfolded BN.
    assert jnp.allclose(out, ref, atol=3e-2, rtol=3e-2), (
        "mismatch vs reference, max abs diff = %f" % float(jnp.max(jnp.abs(out - ref))))

    print("KERNEL_OK")
</pallas_src>

<mosaic_0001>
module attributes {stable_mosaic.version = 11 : i64} {
  func.func @kernel(%arg0: i32, %arg1: memref<16x128xbf16, #tpu.memory_space<vmem>>, %arg2: memref<32x16xbf16, #tpu.memory_space<vmem>>, %arg3: memref<32x1xf32, #tpu.memory_space<vmem>>, %arg4: memref<32x1xf32, #tpu.memory_space<vmem>>, %arg5: memref<32x32xbf16, #tpu.memory_space<vmem>>, %arg6: memref<32x1xf32, #tpu.memory_space<vmem>>, %arg7: memref<32x1xf32, #tpu.memory_space<vmem>>, %arg8: memref<32x1xf32, #tpu.memory_space<vmem>>, %arg9: memref<1x1xf32, #tpu.memory_space<vmem>>, %arg10: memref<1x128xf32, #tpu.memory_space<vmem>>) attributes {dimension_semantics = [#tpu.dimension_semantics<parallel>], iteration_bounds = array<i64: 2>, scalar_prefetch = 0 : i64, scratch_operands = 0 : i64, tpu.core_type = #tpu.core_type<tc>, window_params = [{transform_indices = @transform_0, window_bounds = array<i64: 16, 128>}, {pipeline_mode = #tpu.pipeline_mode<synchronous>, transform_indices = @transform_1, window_bounds = array<i64: 32, 16>}, {pipeline_mode = #tpu.pipeline_mode<synchronous>, transform_indices = @transform_2, window_bounds = array<i64: 32, 1>}, {pipeline_mode = #tpu.pipeline_mode<synchronous>, transform_indices = @transform_3, window_bounds = array<i64: 32, 1>}, {pipeline_mode = #tpu.pipeline_mode<synchronous>, transform_indices = @transform_4, window_bounds = array<i64: 32, 32>}, {pipeline_mode = #tpu.pipeline_mode<synchronous>, transform_indices = @transform_5, window_bounds = array<i64: 32, 1>}, {pipeline_mode = #tpu.pipeline_mode<synchronous>, transform_indices = @transform_6, window_bounds = array<i64: 32, 1>}, {pipeline_mode = #tpu.pipeline_mode<synchronous>, transform_indices = @transform_7, window_bounds = array<i64: 32, 1>}, {pipeline_mode = #tpu.pipeline_mode<synchronous>, transform_indices = @transform_8, window_bounds = array<i64: 1, 1>}, {transform_indices = @transform_9, window_bounds = array<i64: 1, 128>}]} {
    %c0 = arith.constant 0 : index
    %c0_0 = arith.constant 0 : index
    %0 = vector.load %arg1[%c0, %c0_0] : memref<16x128xbf16, #tpu.memory_space<vmem>>, vector<16x128xbf16>
    %c0_1 = arith.constant 0 : index
    %c0_2 = arith.constant 0 : index
    %1 = vector.load %arg2[%c0_1, %c0_2] : memref<32x16xbf16, #tpu.memory_space<vmem>>, vector<32x16xbf16>
    %cst = arith.constant dense<0.000000e+00> : vector<32x128xf32>
    %2 = tpu.matmul %1, %0, %cst {dimension_numbers = #tpu.dot_dimension_numbers<[1], [0], [0], [1], [0, 0, 1, 1], [], []>} : vector<32x16xbf16>, vector<16x128xbf16>, vector<32x128xf32> -> vector<32x128xf32>
    %c0_3 = arith.constant 0 : index
    %c0_4 = arith.constant 0 : index
    %3 = vector.load %arg3[%c0_3, %c0_4] : memref<32x1xf32, #tpu.memory_space<vmem>>, vector<32x1xf32>
    %4 = vector.broadcast %3 : vector<32x1xf32> to vector<32x128xf32>
    %5 = arith.mulf %2, %4 : vector<32x128xf32>
    %c0_5 = arith.constant 0 : index
    %c0_6 = arith.constant 0 : index
    %6 = vector.load %arg4[%c0_5, %c0_6] : memref<32x1xf32, #tpu.memory_space<vmem>>, vector<32x1xf32>
    %7 = vector.broadcast %6 : vector<32x1xf32> to vector<32x128xf32>
    %8 = arith.addf %5, %7 : vector<32x128xf32>
    %cst_7 = arith.constant 0.000000e+00 : f32
    %9 = vector.broadcast %cst_7 : f32 to vector<32x128xf32>
    %10 = arith.maximumf %8, %9 : vector<32x128xf32>
    %11 = arith.truncf %10 : vector<32x128xf32> to vector<32x128xbf16>
    %c0_8 = arith.constant 0 : index
    %c0_9 = arith.constant 0 : index
    %12 = vector.load %arg5[%c0_8, %c0_9] : memref<32x32xbf16, #tpu.memory_space<vmem>>, vector<32x32xbf16>
    %cst_10 = arith.constant dense<0.000000e+00> : vector<32x128xf32>
    %13 = tpu.matmul %12, %11, %cst_10 {dimension_numbers = #tpu.dot_dimension_numbers<[1], [0], [0], [1], [0, 0, 1, 1], [], []>} : vector<32x32xbf16>, vector<32x128xbf16>, vector<32x128xf32> -> vector<32x128xf32>
    %c0_11 = arith.constant 0 : index
    %c0_12 = arith.constant 0 : index
    %14 = vector.load %arg6[%c0_11, %c0_12] : memref<32x1xf32, #tpu.memory_space<vmem>>, vector<32x1xf32>
    %15 = vector.broadcast %14 : vector<32x1xf32> to vector<32x128xf32>
    %16 = arith.mulf %13, %15 : vector<32x128xf32>
    %c0_13 = arith.constant 0 : index
    %c0_14 = arith.constant 0 : index
    %17 = vector.load %arg7[%c0_13, %c0_14] : memref<32x1xf32, #tpu.memory_space<vmem>>, vector<32x1xf32>
    %18 = vector.broadcast %17 : vector<32x1xf32> to vector<32x128xf32>
    %19 = arith.addf %16, %18 : vector<32x128xf32>
    %cst_15 = arith.constant 0.000000e+00 : f32
    %20 = vector.broadcast %cst_15 : f32 to vector<32x128xf32>
    %21 = arith.maximumf %19, %20 : vector<32x128xf32>
    %c0_16 = arith.constant 0 : index
    %c0_17 = arith.constant 0 : index
    %22 = vector.load %arg8[%c0_16, %c0_17] : memref<32x1xf32, #tpu.memory_space<vmem>>, vector<32x1xf32>
    %23 = vector.broadcast %22 : vector<32x1xf32> to vector<32x128xf32>
    %24 = arith.mulf %21, %23 : vector<32x128xf32>
    %cst_18 = arith.constant dense<0.000000e+00> : vector<128xf32>
    %25 = vector.multi_reduction <add>, %24, %cst_18 [0] : vector<32x128xf32> to vector<128xf32>
    %26 = vector.shape_cast %25 : vector<128xf32> to vector<1x128xf32>
    %c0_19 = arith.constant 0 : index
    %c0_20 = arith.constant 0 : index
    %27 = vector.load %arg9[%c0_19, %c0_20] : memref<1x1xf32, #tpu.memory_space<vmem>>, vector<1x1xf32>
    %28 = vector.broadcast %27 : vector<1x1xf32> to vector<1x128xf32>
    %29 = arith.addf %26, %28 : vector<1x128xf32>
    %c0_21 = arith.constant 0 : index
    %c0_22 = arith.constant 0 : index
    %30 = vector.load %arg10[%c0_21, %c0_22] : memref<1x128xf32, #tpu.memory_space<vmem>>, vector<1x128xf32>
    tpu.vector_store %arg10[%c0_21, %c0_22], %29 {strides = array<i32>} : memref<1x128xf32, #tpu.memory_space<vmem>>, vector<1x128xf32>,
    return
  }
  func.func @transform_0(%arg0: i32) -> (i32, i32) {
    %c0_i32 = arith.constant 0 : i32
    %c0_i32_0 = arith.constant 0 : i32
    return %c0_i32, %arg0 : i32, i32
  }
  func.func @transform_1(%arg0: i32) -> (i32, i32) {
    %c0_i32 = arith.constant 0 : i32
    %c0_i32_0 = arith.constant 0 : i32
    %c0_i32_1 = arith.constant 0 : i32
    return %c0_i32, %c0_i32_0 : i32, i32
  }
  func.func @transform_2(%arg0: i32) -> (i32, i32) {
    %c0_i32 = arith.constant 0 : i32
    %c0_i32_0 = arith.constant 0 : i32
    %c0_i32_1 = arith.constant 0 : i32
    return %c0_i32, %c0_i32_0 : i32, i32
  }
  func.func @transform_3(%arg0: i32) -> (i32, i32) {
    %c0_i32 = arith.constant 0 : i32
    %c0_i32_0 = arith.constant 0 : i32
    %c0_i32_1 = arith.constant 0 : i32
    return %c0_i32, %c0_i32_0 : i32, i32
  }
  func.func @transform_4(%arg0: i32) -> (i32, i32) {
    %c0_i32 = arith.constant 0 : i32
    %c0_i32_0 = arith.constant 0 : i32
    %c0_i32_1 = arith.constant 0 : i32
    return %c0_i32, %c0_i32_0 : i32, i32
  }
  func.func @transform_5(%arg0: i32) -> (i32, i32) {
    %c0_i32 = arith.constant 0 : i32
    %c0_i32_0 = arith.constant 0 : i32
    %c0_i32_1 = arith.constant 0 : i32
    return %c0_i32, %c0_i32_0 : i32, i32
  }
  func.func @transform_6(%arg0: i32) -> (i32, i32) {
    %c0_i32 = arith.constant 0 : i32
    %c0_i32_0 = arith.constant 0 : i32
    %c0_i32_1 = arith.constant 0 : i32
    return %c0_i32, %c0_i32_0 : i32, i32
  }
  func.func @transform_7(%arg0: i32) -> (i32, i32) {
    %c0_i32 = arith.constant 0 : i32
    %c0_i32_0 = arith.constant 0 : i32
    %c0_i32_1 = arith.constant 0 : i32
    return %c0_i32, %c0_i32_0 : i32, i32
  }
  func.func @transform_8(%arg0: i32) -> (i32, i32) {
    %c0_i32 = arith.constant 0 : i32
    %c0_i32_0 = arith.constant 0 : i32
    %c0_i32_1 = arith.constant 0 : i32
    return %c0_i32, %c0_i32_0 : i32, i32
  }
  func.func @transform_9(%arg0: i32) -> (i32, i32) {
    %c0_i32 = arith.constant 0 : i32
    %c0_i32_0 = arith.constant 0 : i32
    return %c0_i32, %arg0 : i32, i32
  }
}

</mosaic_0001>

<bundles_post_ra>
// kernel: diabetes_binary_nn_forward.1
= control target key start
LH: loop header
LB: loop body
LE: loop exit
PB: predicated region body
PF: predicated region fallthrough
CT: control target
= control target key end

     0   :  { %s1163_s0 = inlined_call_operand.vmem [shape: bf16[16,256], index: 0, kind: input, shape index: {}]   ;;  %s1164_s1 = inlined_call_operand.vmem [shape: bf16[32,16], index: 1, kind: input, shape index: {}]   ;;  %s1165_s2 = inlined_call_operand.vmem [shape: f32[32,1], index: 2, kind: input, shape index: {}]   ;;  %s1166_s3 = inlined_call_operand.vmem [shape: f32[32,1], index: 3, kind: input, shape index: {}]   ;;  %s1167_s4 = inlined_call_operand.vmem [shape: bf16[32,32], index: 4, kind: input, shape index: {}]   ;;  %s1168_s5 = inlined_call_operand.vmem [shape: f32[32,1], index: 5, kind: input, shape index: {}]   ;;  %s1169_s6 = inlined_call_operand.vmem [shape: f32[32,1], index: 6, kind: input, shape index: {}]   ;;  %s1170_s7 = inlined_call_operand.vmem [shape: f32[32,1], index: 7, kind: input, shape index: {}]   ;;  %s1171_s8 = inlined_call_operand.<no memory space> [shape: f32[1,1], index: 8, kind: input, shape index: {}]   ;;  %s1172_s9 = inlined_call_operand.hbm [shape: f32[1,256], index: 9, kind: output, shape index: {}]  }
   0x1   :  { %v14_v0 = vstv %s1171_s8 }
   0x2   :  { %15 = vst [vmem:[#allocation2] sm:$0x1] %v14_v0 }
   0x3   :  { %16 = vsyncpa [#allocation5], 0 }
   0x4   :  { %18 = vsyncpa [#allocation5 + $0x1], 0  ;;  %s977_s11 = smov 0   ;;  %s979_s12 = smov 0  }
   0x5   :  { %s981_s13 = smov 0   ;;  %s983_s14 = smov 0  }
   0x6 LB: > { %s770_s8 = sadd.s32 4294967295, %s920_s14   ;;  %s771_s15 = sadd.s32 4294967294, %s920_s14   ;;  %s920_s14 = sphi %s983_s14, %s1178_s14   ;;  %s916_s13 = sphi %s981_s13, %s1177_s13   ;;  %s912_s12 = sphi %s979_s12, %s1176_s12   ;;  %s908_s11 = sphi %s977_s11, %s1175_s11  }
   0x7   : > { %s1000_s16 = sadd.s32 1, %s920_s14   ;;  %s31_s17 = sadd.s32 1, %s916_s13 }
   0x8   : > { %s28_s18 = ssub.s32 %s920_s14, %s1000_s16  ;;  %p38_p0 = scmp.ne.s32.totalorder %s916_s13, %s912_s12 }
   0x9   : > { %p29_p1 = scmp.eq.s32.totalorder %s28_s18, 0  ;;  %p39_p2 = scmp.eq.s32.totalorder %s920_s14, 0 }
   0xa   : > { %p236_p3 = scmp.eq.s32.totalorder %s770_s8, 1  ;;  %p241_p4 = scmp.ne.s32.totalorder %s912_s12, %s908_s11 }
   0xb   : > { %s1013_s19 = scalar_select %p29_p1, %s916_s13, %s31_s17  }
   0xc   : > { %p40_p5 = por %p39_p2, %p38_p0  ;;  %p1015_p6 = por %p236_p3, %p38_p0 }
   0xd   : > { %p242_p7 = scmp.eq.s32.totalorder %s771_s15, 1  ;;  %p773_p9 = scmp.ge.s32.totalorder %s920_s14, 2 }
   0xf   : > { %p1019_p8 = por %p242_p7, %p241_p4  ;;  %282 = sbr.rel (%p773_p9) target bundleno = 29 (0x1d), region = 48 }
  0x16   : > { %285 = sbr.rel (!%p40_p5) target bundleno = 29 (0x1d), region = 52  ;;  %s287_s22 = sand.u32 (%p40_p5), 1, %s916_s13  }
  0x17   : > { %s775_s23 = sshll.u32 (%p40_p5), %s920_s14, 2  ;;  %s774_s24 = sshll.u32 (%p40_p5), %s287_s22, 3 }
  0x18   : > { %s291_s27 = scalar_lea.vmem (%p40_p5), %s1163_s0, %s775_s23  ;;  %s289_s28 = scalar_lea.vmem (%p40_p5), [#allocation3], %s774_s24 }
  0x19   : > { %v307_v1 = vld [vmem:[%s291_s27] sm:$0xf] (%p40_p5)  ;;  %v309_v2 = vld [vmem:[%s291_s27 + $0x8] sm:$0xf] (%p40_p5) }
  0x1a   : > { %308 = vst [vmem:[%s289_s28] sm:$0xf] (%p40_p5), %v307_v1  ;;  %310 = vst [vmem:[%s289_s28 + $0x4] sm:$0xf] (%p40_p5), %v309_v2 }
  0x1d PF: > { %p776_p10 = scmp.ge.s32.totalorder %s920_s14, 1  ;;  %p336_p11 = scmp.lt.s32.totalorder %s920_s14, 3 }
  0x1f   : > { %p337_p12 = pnand %p776_p10, %p336_p11 }
  0x20   : > { %s1034_s29 = sand.u32 (!%p337_p12), 1, %s912_s12   ;;  %v854_v3 = vld [vmem:[%s1164_s1] sm:$0xff] (!%p337_p12)   ;;  %vm400_vm0 = vcmask (!%p337_p12), 130048   ;;  %v922_v7 = vmov (!%p337_p12), 0   ;;  %v855_v8 = vld [vmem:[%s1164_s1 + $0x8] sm:$0xff] (!%p337_p12)   ;;  %v458_v11 = vld [vmem:[%s1165_s2 + $0x10] sm:$0xff] (!%p337_p12) }
  0x21   : > { %340 = sbr.rel (%p337_p12) target bundleno = 528 (0x210), region = 93  ;;  %s777_s15 = sshll.u32 (!%p337_p12), %s1034_s29, 3  ;;  %799 = vmatprep.mubr.msk.bf16.mxu0 (!%p337_p12), %vm400_vm0, %v854_v3  ;;  %v456_v4 = vld [vmem:[%s1165_s2] sm:$0xff] (!%p337_p12)  ;;  %851 = vset.pattern.permute.xlu0 (!%p337_p12), %v922_v7  ;;  %v457_v9 = vld [vmem:[%s1165_s2 + $0x8] sm:$0xff] (!%p337_p12)  ;;  %v459_v12 = vld [vmem:[%s1165_s2 + $0x18] sm:$0xff] (!%p337_p12)  ;;  %vm532_vm1 = vcmask (!%p337_p12), 261120  }
  0x22   : > { %v484_v5 = vld [vmem:[%s1166_s3] sm:$0xff] (!%p337_p12)  ;;  %s345_s24 = scalar_lea.vmem (!%p337_p12), [#allocation3], %s777_s15  ;;  %852 = vset.pattern.permute.xlu1 (!%p337_p12), %v922_v7  ;;  %462 = vperm.xlu0 (!%p337_p12), %851, %v456_v4   ;;  %v485_v10 = vld [vmem:[%s1166_s3 + $0x8] sm:$0xff] (!%p337_p12)  ;;  %v486_v13 = vld [vmem:[%s1166_s3 + $0x10] sm:$0xff] (!%p337_p12)  ;;  %s787_s15 = sshll.u32 (!%p337_p12), %s770_s8, 4 }
  0x23   : > { %v853_v6 = vld [vmem:[%s345_s24] sm:$0xff] (!%p337_p12)   ;;  %490 = vperm.xlu1 (!%p337_p12), %852, %v484_v5   ;;  %v487_v14 = vld [vmem:[%s1166_s3 + $0x18] sm:$0xff] (!%p337_p12)  ;;  %v685_v27 = vld [vmem:[#allocation2] sm:$0x1] (!%p337_p12)  ;;  %s376_s17 = scalar_lea.vmem (!%p337_p12), [#allocation4], %s1034_s29  ;;  %s1119_s24 = scalar_lea.hbm (!%p337_p12), %s1172_s9, %s787_s15 }
  0x24   : > { %797 = vmatprep.subr.bf16.mxu0 (!%p337_p12), %v853_v6  ;;  %v588_v15 = vld [vmem:[%s1168_s5] sm:$0xff] (!%p337_p12)  ;;  %v589_v16 = vld [vmem:[%s1168_s5 + $0x8] sm:$0xff] (!%p337_p12)  ;;  %v590_v17 = vld [vmem:[%s1168_s5 + $0x10] sm:$0xff] (!%p337_p12)  ;;  %s710_s18 = sshll.u32 (!%p337_p12), %s376_s17, 4  ;;  %s698_s25 = scalar_lea.sflag (!%p337_p12), [#allocation5], %s1034_s29  ;;  %s1121_s18 = int_to_ptr.vmem [resolvable:$true] %s710_s18 }
  0x25   : > { %798 = vmatpush3.bf16.msra.mxu0 (!%p337_p12), %v853_v6  ;;  %v616_v18 = vld [vmem:[%s1169_s6] sm:$0xff] (!%p337_p12)  ;;  %v617_v19 = vld [vmem:[%s1169_s6 + $0x8] sm:$0xff] (!%p337_p12)  ;;  %v591_v20 = vld [vmem:[%s1168_s5 + $0x18] sm:$0xff] (!%p337_p12)  ;;  %s858_s26 = scalar_lea.vmem (!%p337_p12), %s1121_s18, 16  ;;  %s923_s8 = smov (!%p337_p12), [#allocation4]  }
  0x26   : > { %467 = vperm.xlu0 (!%p337_p12), %851, %v457_v9   ;;  %v618_v21 = vld [vmem:[%s1169_s6 + $0x10] sm:$0xff] (!%p337_p12)  ;;  %v619_v22 = vld [vmem:[%s1169_s6 + $0x18] sm:$0xff] (!%p337_p12)  ;;  %v648_v23 = vld [vmem:[%s1170_s7] sm:$0xff] (!%p337_p12)  ;;  %p859_p13 = scmp.ne.s32.totalorder (!%p337_p12), %s1121_s18, %s858_s26  ;;  %s862_s27 = sshll.u32 (!%p337_p12), %s923_s8, 4  ;;  %s863_s27 = int_to_ptr.vmem [resolvable:$false] %s862_s27 }
  0x27   : > { %495 = vperm.xlu1 (!%p337_p12), %852, %v485_v10   ;;  %v649_v24 = vld [vmem:[%s1170_s7 + $0x8] sm:$0xff] (!%p337_p12)  ;;  %v650_v25 = vld [vmem:[%s1170_s7 + $0x10] sm:$0xff] (!%p337_p12)  ;;  %v651_v26 = vld [vmem:[%s1170_s7 + $0x18] sm:$0xff] (!%p337_p12)  ;;  %s864_s28 = scalar_lea.vmem (!%p337_p12), %s863_s27, 32  ;;  %p865_p2 = scmp.lt.s32.totalorder (!%p337_p12), %s1121_s18, %s863_s27 }
  0x28   : > { %800 = vmatmul.mubr.msk.bf16.vlgmr.msra.gmra.mrb[0].mxu0 %vm400_vm0, %v855_v8  ;;  %v856_v28 = vld [vmem:[%s1167_s4] sm:$0xff]   ;;  %v857_v55 = vld [vmem:[%s1167_s4 + $0x8] sm:$0xff]   ;;  %p860_p0 = pnand %p859_p13, %p1015_p6  ;;  %p866_p3 = scmp.lt.s32.totalorder %s864_s28, %s858_s26 }
  0x29   : > { %807 = vmatprep.mubr.msk.bf16.mxu1 %vm532_vm1, %v856_v28 }
  0x2a   : > { %472 = vperm.xlu0 %851, %v458_v11   ;;  %p861_p1 = pneg %p860_p0  ;;  %p867_p4 = por %p866_p3, %p865_p2 }
  0x2b   : > { %477 = vperm.xlu1 %852, %v459_v12  }
  0x2c   : > { %p868_p5 = pnand %p867_p4, %p861_p1 }
  0x2e   : > { %500 = vperm.xlu0 %851, %v486_v13  }
  0x2f   : > { %505 = vperm.xlu1 %852, %v487_v14  }
  0x32   : > { %594 = vperm.xlu0 %851, %v588_v15  }
  0x33   : > { %599 = vperm.xlu1 %852, %v589_v16  }
  0x36   : > { %604 = vperm.xlu0 %851, %v590_v17  }
  0x37   : > { %622 = vperm.xlu1 %852, %v616_v18  }
  0x3a   : > { %627 = vperm.xlu0 %851, %v617_v19  }
  0x3b   : > { %609 = vperm.xlu1 %852, %v591_v20  }
  0x3e   : > { %632 = vperm.xlu0 %851, %v618_v21  }
  0x3f   : > { %637 = vperm.xlu1 %852, %v619_v22  }
  0x42   : > { %654 = vperm.xlu0 %851, %v648_v23  }
  0x43   : > { %659 = vperm.xlu1 %852, %v649_v24  }
  0x46   : > { %664 = vperm.xlu0 %851, %v650_v25  }
  0x47   : > { %669 = vperm.xlu1 %852, %v651_v26   ;;  %v691_v26 = vlaneseq }
  0x4a   : > { %688 = vperm.xlu0 %851, %v685_v27  }
  0xa1   : > { %v463_v29 = vpop.permute.xlu0 %462 }
  0xa2   : > { %v491_v30 = vpop.permute.xlu1 %490 }
  0xa5   : > { %v468_v31 = vpop.permute.xlu0 %467 }
  0xa6   : > { %v496_v32 = vpop.permute.xlu1 %495 }
  0xa9   : > { %v473_v33 = vpop.permute.xlu0 %472 }
  0xaa   : > { %v478_v34 = vpop.permute.xlu1 %477 }
  0xad   : > { %v501_v38 = vpop.permute.xlu0 %500 }
  0xae   : > { %v506_v44 = vpop.permute.xlu1 %505 }
  0xb1   : > { %v595_v56 = vpop.permute.xlu0 %594 }
  0xb2   : > { %v600_v57 = vpop.permute.xlu1 %599 }
  0xb5   : > { %v605_v58 = vpop.permute.xlu0 %604 }
  0xb6   : > { %v623_v59 = vpop.permute.xlu1 %622 }
  0xb9   : > { %v628_v60 = vpop.permute.xlu0 %627 }
  0xba   : > { %v610_v61 = vpop.permute.xlu1 %609 }
  0xbd   : > { %v633_v62 = vpop.permute.xlu0 %632 }
  0xbe   : > { %v638_v0 = vpop.permute.xlu1 %637 }
  0xc1   : > { %v655_v10 = vpop.permute.xlu0 %654 }
  0xc2   : > { %v660_v14 = vpop.permute.xlu1 %659 }
  0xc5   : > { %v665_v20 = vpop.permute.xlu0 %664 }
  0xc6   : > { %v670_v23 = vpop.permute.xlu1 %669 }
  0xfb   : > { %v801_v35 = vpop.f32.mrb[0].mxu0 }
  0xfc   : > { %v482_v36 = vmul.f32 %v801_v35, %v473_v33  ;;  %v441_v37 = vpop.f32.mrb[1].mxu0 }
  0xfd   : > { %v480_v39 = vmul.f32 %v463_v29, %v441_v37  ;;  %v802_v40 = vpop.f32.mrb[2].mxu0  ;;  %v692_v29 = vshrl.u32 %v691_v26, 7 }
  0xfe   : > { %v510_v41 = vadd.f32 %v501_v38, %v482_v36  ;;  %v483_v42 = vmul.f32 %v802_v40, %v478_v34  ;;  %v444_v43 = vpop.f32.mrb[3].mxu0  ;;  %v689_v34 = vpop.permute.xlu0 %688 }
  0xff   : > { %v508_v45 = vadd.f32 %v491_v30, %v480_v39  ;;  %v481_v46 = vmul.f32 %v468_v31, %v444_v43 }
 0x100   : > { %v511_v47 = vadd.f32 %v506_v44, %v483_v42  ;;  %v514_v49 = vmax.f32 %v510_v41, 0.0 }
 0x101   : > { %v509_v48 = vadd.f32 %v496_v32, %v481_v46  ;;  %v512_v51 = vmax.f32 %v508_v45, 0.0  ;;  %v693_v32 = vsub.s32 0, %v692_v29 }
 0x102   : > { %v515_v50 = vmax.f32 %v511_v47, 0.0 }
 0x103   : > { %v513_v52 = vmax.f32 %v509_v48, 0.0  ;;  %v694_v36 = vrot.slane %v689_v34, %v693_v32 }
 0x104   : > { %v517_v53 = vpack.c.bf16 %v515_v50, %v514_v49 }
 0x105   : > { %v516_v54 = vpack.c.bf16 %v513_v52, %v512_v51 }
 0x107   : > { %803 = vmatprep.subr.bf16.mxu1 %v516_v54 }
 0x108   : > { %804 = vmatpush3.bf16.msra.mxu1 %v516_v54 }
 0x109   : > { %805 = vmatprep.subr.bf16.mxu1 %v517_v53 }
 0x10c   : > { %806 = vmatpush3.bf16.msra.mxu1 %v517_v53 }
 0x10f   : > { %808 = vmatmul.mubr.msk.bf16.vlgmr.msra.gmra.mrb[0].mxu1 %vm532_vm1, %v857_v55 }
 0x1e2   : > { %v809_v63 = vpop.f32.mrb[0].mxu1 }
 0x1e3   : > { %v614_v1 = vmul.f32 %v809_v63, %v605_v58  ;;  %v573_v2 = vpop.f32.mrb[1].mxu1 }
 0x1e4   : > { %v612_v3 = vmul.f32 %v595_v56, %v573_v2  ;;  %v810_v4 = vpop.f32.mrb[2].mxu1 }
 0x1e5   : > { %v615_v5 = vmul.f32 %v810_v4, %v610_v61  ;;  %v576_v6 = vpop.f32.mrb[3].mxu1  ;;  %v642_v7 = vadd.f32 %v633_v62, %v614_v1 }
 0x1e6   : > { %v640_v8 = vadd.f32 %v623_v59, %v612_v3  ;;  %v613_v9 = vmul.f32 %v600_v57, %v576_v6 }
 0x1e7   : > { %v643_v12 = vadd.f32 %v638_v0, %v615_v5  ;;  %v646_v15 = vmax.f32 %v642_v7, 0.0 }
 0x1e8   : > { %v644_v11 = vmax.f32 %v640_v8, 0.0  ;;  %v641_v13 = vadd.f32 %v628_v60, %v613_v9 }
 0x1e9   : > { %v647_v18 = vmax.f32 %v643_v12, 0.0  ;;  %v674_v21 = vmul.f32 %v665_v20, %v646_v15 }
 0x1ea   : > { %v645_v16 = vmax.f32 %v641_v13, 0.0  ;;  %v672_v17 = vmul.f32 %v655_v10, %v644_v11 }
 0x1eb   : > { %v675_v24 = vmul.f32 %v670_v23, %v647_v18 }
 0x1ec   : > { %v673_v19 = vmul.f32 %v660_v14, %v645_v16 }
 0x1ee   : > { %v676_v22 = vadd.f32 %v673_v19, %v672_v17 }
 0x1f0   : > { %v677_v25 = vadd.f32 %v676_v22, %v674_v21 }
 0x1f2   : > { %v678_v27 = vadd.f32 %v677_v25, %v675_v24 }
 0x1f4   : > { %v679_v28 = vrot.slane %v678_v27, 4 }
 0x1f6   : > { %v680_v30 = vadd.f32 %v679_v28, %v678_v27 }
 0x1f8   : > { %v681_v31 = vrot.slane %v680_v30, 2 }
 0x1fa   : > { %v682_v33 = vadd.f32 %v681_v31, %v680_v30 }
 0x1fc   : > { %v683_v35 = vrot.slane %v682_v33, 1 }
 0x1fe   : > { %v684_v37 = vadd.f32 %v683_v35, %v682_v33 }
 0x200   : > { %v695_v38 = vadd.f32 %v694_v36, %v684_v37 }
 0x202   : > { %696 = vst [vmem:[%s376_s17] sm:$0x1] %v695_v38 }
 0x203   : > { %871 = shalt.err (!%p868_p5)
}
 0x204   : > { %s872_s29 = scalar_lea.hbm %s1119_s24, 16  ;;  %s876_s15 = scalar_lea.hbm %s1172_s9, 32 }
 0x205   : > { %p873_p7 = scmp.ne.s32.totalorder %s1119_s24, %s872_s29  ;;  %p877_p12 = scmp.lt.u32.totalorder %s1119_s24, %s1172_s9 }
 0x206   : > { %p878_p13 = scmp.lt.u32.totalorder %s876_s15, %s872_s29  ;;  %p880_p1 = scmp.lt.u32.totalorder %s872_s29, %s1119_s24 }
 0x207   : > { %p874_p10 = pnand %p873_p7, %p1015_p6 }
 0x208   : > { %p879_p0 = por %p878_p13, %p877_p12 }
 0x209   : > { %p875_p11 = pneg %p874_p10 }
 0x20a   : > { %p881_p2 = por %p880_p1, %p879_p0 }
 0x20c   : > { %p882_p3 = pnand %p881_p2, %p875_p11 }
 0x20e   : > { %885 = shalt.err (!%p882_p3)
}
 0x20f   : > { %811 = dma.vmem_to_hbm [thread:$0]  (%p1015_p6), %s1121_s18, 16, %s1119_s24, %s698_s25  }
 0x210 PF: > { %s722_s23 = sand.u32 1, %s908_s11   ;;  %p814_p4 = pnand %p773_p9, %p1019_p8 }
 0x211   : > { %s723_s26 = scalar_lea.sflag [#allocation5], %s722_s23 }
 0x212   : > { %903 = dma.done.wait (!%p814_p4), %s723_s26, 16  }
 0x213   : > { %905 = vsyncadd (!%p814_p4), %s723_s26, 4294967280  ;;  %p21_p5 = scmp.ge.s32.totalorder %s1000_s16, 4   ;;  %s1175_s11 = smov %s912_s12 }
 0x214   : > { %s1176_s12 = smov %s916_s13  ;;  %s1177_s13 = smov %s1013_s19 }
 0x215   : > { %s1178_s14 = smov %s1000_s16  ;;  %23 = sbr.rel (!%p21_p5) target bundleno = 6 (0x6), region = 137 }
 0x21c   :  { %727 = vsyncpa [#allocation5], 1 }
 0x21d   :  { %729 = vsyncpa [#allocation5 + $0x1], 1 }

</bundles_post_ra>
